<compile_context>
chip_gen: v7x
topology: tpu7x:2x2x1
jax: 0.10.0
libtpu: 0.0.40
codegen_flags: <defaults>
</compile_context>

<pallas_src>
import functools

import jax
import jax.numpy as jnp
from jax.experimental import pallas as pl
from jax.experimental.pallas import tpu as pltpu


# ------------------------------- helpers --------------------------------------

def _round_up(x, m):
    return ((x + m - 1) // m) * m


def _tpu_config():
    """(default dst tile, VMEM budget bytes, use bf16 score math) per generation."""
    try:
        kind = jax.devices()[0].device_kind.lower()
    except Exception:
        kind = ""
    if "v7" in kind:          # 64 MiB VMEM/core -> tighter budget, bf16 VPU/EUP
        return 256, 40 << 20, True
    if "v6" in kind:          # 128 MiB VMEM, bf16 VPU/EUP
        return 512, 96 << 20, True
    if "v5" in kind:          # memory-bound, no bf16 VPU/EUP -> big tiles, f32 math
        return 512, 96 << 20, False
    return 256, 48 << 20, False


def _block_diag_att(att):
    """att: [H, C] -> [H*C, H] block-diagonal, so (proj @ m)[:, h] = <proj_h, att_h>."""
    h, c = att.shape
    eye = jnp.eye(h, dtype=att.dtype)
    return (att[:, :, None] * eye[:, None, :]).reshape(h * c, h)


# ----------------------- projection kernel (per layer) -------------------------

def _proj_kernel(h_ref, w_ref, asrc_ref, adst_ref, proj_ref, a_src_ref, a_dst_ref):
    # bf16 MXU operands, f32 accumulation
    proj = jnp.dot(h_ref[...].astype(w_ref.dtype), w_ref[...],
                   preferred_element_type=jnp.float32)               # [TN, H*C] f32
    # attention coefficients from the f32 accumulator (MXU, block-diagonal att)
    a_src_ref[...] = jnp.dot(proj, asrc_ref[...], preferred_element_type=jnp.float32)
    a_dst_ref[...] = jnp.dot(proj, adst_ref[...], preferred_element_type=jnp.float32)
    # resident value tensor is emitted in bf16 (halves VMEM + HBM traffic)
    proj_ref[...] = proj.astype(proj_ref.dtype)


# ------------------ masked-softmax attention kernel (per layer) ----------------

def _attn_kernel(adj_ref, v_ref, a_src_ref, a_dst_ref, bias_ref, out_ref,
                 *, heads, out_dim, score_dtype):
    adj = adj_ref[...]                                        # [TM, Np] int8 (streamed)
    # additive mask hoisted out of the head loop; masked entries underflow to 0
    add_mask = jnp.where(adj != 0, 0.0, -1e30).astype(score_dtype)
    a_dst = a_dst_ref[...].astype(score_dtype)                # [TM, H]
    a_src = a_src_ref[...].astype(score_dtype)                # [H, Np] lane-dense rows
    tm = adj.shape[0]

    acc = jnp.zeros((tm, out_dim), jnp.float32)
    for h in range(heads):                                    # small static -> unrolled
        score = a_dst[:, h:h + 1] + a_src[h:h + 1, :]         # [TM, Np]
        score = jnp.maximum(score, 0.2 * score)               # LeakyReLU(0.2)
        score = score + add_mask
        score = score - jnp.max(score, axis=1, keepdims=True)
        p = jnp.exp(score).astype(jnp.bfloat16)               # masked -> exact 0.0
        # V' = [values | 1]: the softmax row-sum comes out of the MXU for free.
        agg = jnp.dot(p, v_ref[h], preferred_element_type=jnp.float32)   # [TM, C+1]
        inv = pl.reciprocal(agg[:, out_dim:out_dim + 1], approx=True)    # [TM, 1]
        acc = acc + agg[:, :out_dim] * inv                    # deferred normalization

    # fused epilogue: mean over heads + bias + sigmoid (matches reference layer act.)
    out_ref[...] = jax.nn.sigmoid(acc * (1.0 / heads) + bias_ref[...])


# ------------------------ pooling + graph-head kernel --------------------------

def _head_kernel(pool_ref, h2_ref, wg_ref, bg_ref, out_ref):
    pooled = jnp.dot(pool_ref[...], h2_ref[...],
                     preferred_element_type=jnp.float32)              # [G, C]
    g = jnp.dot(pooled, wg_ref[...],
                preferred_element_type=jnp.float32) + bg_ref[...]     # [G, 1]
    out_ref[...] = jax.nn.sigmoid(g)


# -------------------------------- layer glue -----------------------------------

def _gat_layer_call(h_in, adj_i8, w, att_src, att_dst, bias, *, heads, out_dim,
                    dst_tile, vmem_cap, score_dtype):
    n_pad, fin = h_in.shape
    hc = heads * out_dim
    tm = dst_tile
    grid = (n_pad // tm,)

    att_src_mat = _block_diag_att(att_src)            # [H*C, H]
    att_dst_mat = _block_diag_att(att_dst)            # [H*C, H]

    # 1) projection + attention coefficients, row-tiled & pipelined
    proj, a_src, a_dst = pl.pallas_call(
        _proj_kernel,
        out_shape=(jax.ShapeDtypeStruct((n_pad, hc), jnp.bfloat16),
                   jax.ShapeDtypeStruct((n_pad, heads), jnp.float32),
                   jax.ShapeDtypeStruct((n_pad, heads), jnp.float32)),
        grid_spec=pltpu.PrefetchScalarGridSpec(
            num_scalar_prefetch=0,
            grid=grid,
            in_specs=[
                pl.BlockSpec((tm, fin), lambda i: (i, 0)),      # node rows
                pl.BlockSpec((fin, hc), lambda i: (0, 0)),      # W (bf16)
                pl.BlockSpec((hc, heads), lambda i: (0, 0)),    # att_src (block diag)
                pl.BlockSpec((hc, heads), lambda i: (0, 0)),    # att_dst (block diag)
            ],
            out_specs=(pl.BlockSpec((tm, hc), lambda i: (i, 0)),
                       pl.BlockSpec((tm, heads), lambda i: (i, 0)),
                       pl.BlockSpec((tm, heads), lambda i: (i, 0))),
        ),
        compiler_params=pltpu.CompilerParams(
            dimension_semantics=("parallel",)),
    )(h_in, w.astype(jnp.bfloat16), att_src_mat, att_dst_mat)

    # wrapper-side layout plumbing (cheap, once per layer):
    a_src_t = a_src.T                                                   # [H, Np] f32
    v = jnp.transpose(proj.reshape(n_pad, heads, out_dim), (1, 0, 2))   # [H, Np, C] bf16
    v_aug = jnp.concatenate(
        [v, jnp.ones((heads, n_pad, 1), jnp.bfloat16)], axis=-1)        # [H, Np, C+1]

    # 2) masked attention softmax + aggregation, tiled over destination nodes
    flops = 2 * heads * n_pad * n_pad * (out_dim + 1) + 8 * heads * n_pad * n_pad
    transcendentals = heads * n_pad * n_pad
    bytes_accessed = (n_pad * n_pad                                # int8 adj
                      + 2 * heads * n_pad * (out_dim + 1)          # bf16 values
                      + 4 * (2 * n_pad * heads + n_pad * out_dim))

    score_bytes = 2 if score_dtype == jnp.bfloat16 else 4
    est = (2 * tm * n_pad                                 # adj, double-buffered (int8)
           + 2 * heads * n_pad * (out_dim + 1) * 2        # resident V' (pipeline bufs)
           + 2 * heads * n_pad * 4                        # resident a_src^T
           + 4 * tm * heads * 4 + 4 * tm * out_dim * 4
           + 4 * tm * n_pad * score_bytes)                # score / exp temporaries
    vmem_limit = int(min(vmem_cap, max(24 << 20, 2 * est)))

    kern = functools.partial(_attn_kernel, heads=heads, out_dim=out_dim,
                             score_dtype=score_dtype)

    # TODO(synk): once pipeline_mode=pl.Buffered(1) is confirmed on the target jax
    # version, single-buffer the constant-index residents (v_aug / a_src_t / bias).
    return pl.pallas_call(
        kern,
        out_shape=jax.ShapeDtypeStruct((n_pad, out_dim), jnp.float32),
        grid_spec=pltpu.PrefetchScalarGridSpec(
            num_scalar_prefetch=0,
            grid=grid,
            in_specs=[
                pl.BlockSpec((tm, n_pad), lambda i: (i, 0)),                     # adj int8
                pl.BlockSpec((heads, n_pad, out_dim + 1), lambda i: (0, 0, 0)),  # V' bf16
                pl.BlockSpec((heads, n_pad), lambda i: (0, 0)),                  # a_src^T
                pl.BlockSpec((tm, heads), lambda i: (i, 0)),                     # a_dst
                pl.BlockSpec((1, out_dim), lambda i: (0, 0)),                    # bias
            ],
            out_specs=pl.BlockSpec((tm, out_dim), lambda i: (i, 0)),
        ),
        compiler_params=pltpu.CompilerParams(
            dimension_semantics=("parallel",),        # shard dst tiles across TCs
            vmem_limit_bytes=vmem_limit),
        cost_estimate=pl.CostEstimate(flops=flops,
                                      transcendentals=transcendentals,
                                      bytes_accessed=bytes_accessed),
    )(adj_i8, v_aug, a_src_t, a_dst, bias)


# --------------------------------- forward -------------------------------------

def gat_forward(params, x, edge_index, edge_type, batch, num_graphs, dst_tile=None):
    """Mirrors GAT.forward(x, edge_index, edge_type, batch)."""
    del edge_type  # unused by the reference forward
    n = x.shape[0]
    tile_default, vmem_cap, bf16_scores = _tpu_config()
    score_dtype = jnp.bfloat16 if bf16_scores else jnp.float32

    # --- glue: embedding lookup + concat (gather) ---
    x_emb = jnp.concatenate(
        [jnp.take(params["emb"][i], x[:, i], axis=0) for i in range(6)],
        axis=1).astype(jnp.float32)                               # [N, 6*in_embd]

    # --- destination tile + padded node count (keeps the tiled path for every N) ---
    n32 = _round_up(n, 32)                                        # int8 sublane tile
    tm = dst_tile if dst_tile is not None else tile_default
    tm = max(32, _round_up(min(int(tm), n32), 32))
    while tm > 32 and tm * n32 * 18 > int(vmem_cap * 0.5):        # fit the budget
        tm //= 2
    tm = max(32, _round_up(tm, 32))
    n_pad = _round_up(n32, tm)
    pad = n_pad - n

    x_emb = jnp.pad(x_emb, ((0, pad), (0, 0)))

    # --- glue: edge_index -> dense int8 adjacency with self loops (scatter) ---
    # TODO(synk): for large sparse graphs use a CSR / scalar-prefetch neighbour-list
    # formulation so per-layer work scales with |E| instead of N^2.
    src, dst = edge_index[0], edge_index[1]
    adj = jnp.zeros((n_pad, n_pad), jnp.int8).at[dst, src].set(1)
    diag = jnp.arange(n_pad)
    adj = adj.at[diag, diag].set(1)          # self loops (pad rows too -> finite rows)

    # --- glue: batch vector -> pooling one-hot (pad nodes excluded) ---
    batch_pad = jnp.concatenate(
        [batch.astype(jnp.int32), jnp.full((pad,), num_graphs, jnp.int32)])
    pool = (batch_pad[None, :] == jnp.arange(num_graphs)[:, None]).astype(jnp.float32)

    layer_embd = params["b1"].shape[1]
    out_embd = params["b2"].shape[1]

    h1 = _gat_layer_call(x_emb, adj, params["w1"], params["as1"], params["ad1"],
                         params["b1"], heads=2, out_dim=layer_embd,
                         dst_tile=tm, vmem_cap=vmem_cap, score_dtype=score_dtype)
    h2 = _gat_layer_call(h1, adj, params["w2"], params["as2"], params["ad2"],
                         params["b2"], heads=4, out_dim=out_embd,
                         dst_tile=tm, vmem_cap=vmem_cap, score_dtype=score_dtype)

    vmem = pl.BlockSpec(memory_space=pltpu.MemorySpace.VMEM)
    return pl.pallas_call(
        _head_kernel,
        out_shape=jax.ShapeDtypeStruct((num_graphs, 1), jnp.float32),
        in_specs=[vmem] * 4,
        out_specs=vmem,
    )(pool, h2, params["wg"], params["bg"])


# --------------------------- Parameter creation --------------------------------

def make_params(key, in_embd, layer_embd, out_embd):
    vocab_sizes = [33, 5, 3, 4, 2, 3]
    keys = jax.random.split(key, 16)

    def glorot(k, shape):
        fan_in, fan_out = shape[0], shape[-1]
        lim = jnp.sqrt(6.0 / (fan_in + fan_out))
        return jax.random.uniform(k, shape, jnp.float32, -lim, lim)

    params = {
        # nn.Embedding default init: N(0, 1)
        "emb": [jax.random.normal(keys[i], (vocab_sizes[i], in_embd), jnp.float32)
                for i in range(6)],
        # GATConv1: in=6*in_embd, out=layer_embd, heads=2, concat=False
        "w1":  glorot(keys[6],  (6 * in_embd, 2 * layer_embd)),
        "as1": glorot(keys[7],  (2, layer_embd)),
        "ad1": glorot(keys[8],  (2, layer_embd)),
        "b1":  jnp.zeros((1, layer_embd), jnp.float32),
        # GATConv2: in=layer_embd, out=out_embd, heads=4, concat=False
        "w2":  glorot(keys[9],  (layer_embd, 4 * out_embd)),
        "as2": glorot(keys[10], (4, out_embd)),
        "ad2": glorot(keys[11], (4, out_embd)),
        "b2":  jnp.zeros((1, out_embd), jnp.float32),
        # graph_linear: Linear(out_embd, 1)
        "wg":  glorot(keys[12], (out_embd, 1)),
        "bg":  jnp.zeros((1, 1), jnp.float32),
    }
    # TODO(synk): GlobalAttention pool is constructed in __init__ but never used by
    # the reference forward (it uses global_add_pool), so it is not built here.
    return params


# ----------------------------------- Main ---------------------------------------

if __name__ == "__main__":
    key = jax.random.PRNGKey(0)
    in_embd, layer_embd, out_embd = 8, 16, 16
    num_graphs, nodes_per_graph = 2, 24
    n = num_graphs * nodes_per_graph

    params = make_params(key, in_embd, layer_embd, out_embd)

    # categorical node features [N, 6] with the embedding-table vocab sizes
    kx, _ = jax.random.split(key)
    vocab = jnp.array([33, 5, 3, 4, 2, 3], jnp.int32)
    x = (jax.random.randint(kx, (n, 6), 0, 1_000_000) % vocab[None, :]).astype(jnp.int32)

    # bidirectional chain inside each graph
    srcs, dsts = [], []
    for g in range(num_graphs):
        base = g * nodes_per_graph
        for i in range(nodes_per_graph - 1):
            srcs += [base + i, base + i + 1]
            dsts += [base + i + 1, base + i]
    edge_index = jnp.array([srcs, dsts], jnp.int32)           # [2, E]
    edge_type = jnp.zeros((edge_index.shape[1],), jnp.int32)  # unused in forward
    batch = jnp.repeat(jnp.arange(num_graphs, dtype=jnp.int32), nodes_per_graph)

    # dst_tile=32 -> N padded to 64, grid=(2,): exercises the tiled/pipelined path
    out = gat_forward(params, x, edge_index, edge_type, batch, num_graphs, dst_tile=32)
    out = jax.block_until_ready(out)
    assert out.shape == (num_graphs, 1)
    assert bool(jnp.all(jnp.isfinite(out)))
    print("KERNEL_OK")
</pallas_src>

<mosaic_0001>
module attributes {stable_mosaic.version = 11 : i64} {
  func.func @_proj_kernel(%arg0: i32, %arg1: memref<32x48xf32, #tpu.memory_space<vmem>>, %arg2: memref<48x32xbf16, #tpu.memory_space<vmem>>, %arg3: memref<32x2xf32, #tpu.memory_space<vmem>>, %arg4: memref<32x2xf32, #tpu.memory_space<vmem>>, %arg5: memref<32x32xbf16, #tpu.memory_space<vmem>>, %arg6: memref<32x2xf32, #tpu.memory_space<vmem>>, %arg7: memref<32x2xf32, #tpu.memory_space<vmem>>) attributes {dimension_semantics = [#tpu.dimension_semantics<parallel>], iteration_bounds = array<i64: 2>, scalar_prefetch = 0 : i64, scratch_operands = 0 : i64, tpu.core_type = #tpu.core_type<tc>, window_params = [{transform_indices = @transform_0, window_bounds = array<i64: 32, 48>}, {pipeline_mode = #tpu.pipeline_mode<synchronous>, transform_indices = @transform_1, window_bounds = array<i64: 48, 32>}, {pipeline_mode = #tpu.pipeline_mode<synchronous>, transform_indices = @transform_2, window_bounds = array<i64: 32, 2>}, {pipeline_mode = #tpu.pipeline_mode<synchronous>, transform_indices = @transform_3, window_bounds = array<i64: 32, 2>}, {transform_indices = @transform_4, window_bounds = array<i64: 32, 32>}, {transform_indices = @transform_5, window_bounds = array<i64: 32, 2>}, {transform_indices = @transform_6, window_bounds = array<i64: 32, 2>}]} {
    %c0 = arith.constant 0 : index
    %c0_0 = arith.constant 0 : index
    %0 = vector.load %arg1[%c0, %c0_0] : memref<32x48xf32, #tpu.memory_space<vmem>>, vector<32x48xf32>
    %1 = arith.truncf %0 : vector<32x48xf32> to vector<32x48xbf16>
    %c0_1 = arith.constant 0 : index
    %c0_2 = arith.constant 0 : index
    %2 = vector.load %arg2[%c0_1, %c0_2] : memref<48x32xbf16, #tpu.memory_space<vmem>>, vector<48x32xbf16>
    %cst = arith.constant dense<0.000000e+00> : vector<32x32xf32>
    %3 = tpu.matmul %1, %2, %cst {dimension_numbers = #tpu.dot_dimension_numbers<[1], [0], [0], [1], [0, 0, 1, 1], [], []>} : vector<32x48xbf16>, vector<48x32xbf16>, vector<32x32xf32> -> vector<32x32xf32>
    %c0_3 = arith.constant 0 : index
    %c0_4 = arith.constant 0 : index
    %4 = vector.load %arg3[%c0_3, %c0_4] : memref<32x2xf32, #tpu.memory_space<vmem>>, vector<32x2xf32>
    %cst_5 = arith.constant dense<0.000000e+00> : vector<32x2xf32>
    %5 = tpu.matmul %3, %4, %cst_5 {dimension_numbers = #tpu.dot_dimension_numbers<[1], [0], [0], [1], [0, 0, 1, 1], [], []>} : vector<32x32xf32>, vector<32x2xf32>, vector<32x2xf32> -> vector<32x2xf32>
    %c0_6 = arith.constant 0 : index
    %c0_7 = arith.constant 0 : index
    %6 = vector.load %arg6[%c0_6, %c0_7] : memref<32x2xf32, #tpu.memory_space<vmem>>, vector<32x2xf32>
    tpu.vector_store %arg6[%c0_6, %c0_7], %5 {strides = array<i32>} : memref<32x2xf32, #tpu.memory_space<vmem>>, vector<32x2xf32>,
    %c0_8 = arith.constant 0 : index
    %c0_9 = arith.constant 0 : index
    %7 = vector.load %arg4[%c0_8, %c0_9] : memref<32x2xf32, #tpu.memory_space<vmem>>, vector<32x2xf32>
    %cst_10 = arith.constant dense<0.000000e+00> : vector<32x2xf32>
    %8 = tpu.matmul %3, %7, %cst_10 {dimension_numbers = #tpu.dot_dimension_numbers<[1], [0], [0], [1], [0, 0, 1, 1], [], []>} : vector<32x32xf32>, vector<32x2xf32>, vector<32x2xf32> -> vector<32x2xf32>
    %c0_11 = arith.constant 0 : index
    %c0_12 = arith.constant 0 : index
    %9 = vector.load %arg7[%c0_11, %c0_12] : memref<32x2xf32, #tpu.memory_space<vmem>>, vector<32x2xf32>
    tpu.vector_store %arg7[%c0_11, %c0_12], %8 {strides = array<i32>} : memref<32x2xf32, #tpu.memory_space<vmem>>, vector<32x2xf32>,
    %10 = arith.truncf %3 : vector<32x32xf32> to vector<32x32xbf16>
    %c0_13 = arith.constant 0 : index
    %c0_14 = arith.constant 0 : index
    %11 = vector.load %arg5[%c0_13, %c0_14] : memref<32x32xbf16, #tpu.memory_space<vmem>>, vector<32x32xbf16>
    tpu.vector_store %arg5[%c0_13, %c0_14], %10 {strides = array<i32>} : memref<32x32xbf16, #tpu.memory_space<vmem>>, vector<32x32xbf16>,
    return
  }
  func.func @transform_0(%arg0: i32) -> (i32, i32) {
    %c0_i32 = arith.constant 0 : i32
    %c0_i32_0 = arith.constant 0 : i32
    return %arg0, %c0_i32 : i32, i32
  }
  func.func @transform_1(%arg0: i32) -> (i32, i32) {
    %c0_i32 = arith.constant 0 : i32
    %c0_i32_0 = arith.constant 0 : i32
    %c0_i32_1 = arith.constant 0 : i32
    return %c0_i32, %c0_i32_0 : i32, i32
  }
  func.func @transform_2(%arg0: i32) -> (i32, i32) {
    %c0_i32 = arith.constant 0 : i32
    %c0_i32_0 = arith.constant 0 : i32
    %c0_i32_1 = arith.constant 0 : i32
    return %c0_i32, %c0_i32_0 : i32, i32
  }
  func.func @transform_3(%arg0: i32) -> (i32, i32) {
    %c0_i32 = arith.constant 0 : i32
    %c0_i32_0 = arith.constant 0 : i32
    %c0_i32_1 = arith.constant 0 : i32
    return %c0_i32, %c0_i32_0 : i32, i32
  }
  func.func @transform_4(%arg0: i32) -> (i32, i32) {
    %c0_i32 = arith.constant 0 : i32
    %c0_i32_0 = arith.constant 0 : i32
    return %arg0, %c0_i32 : i32, i32
  }
  func.func @transform_5(%arg0: i32) -> (i32, i32) {
    %c0_i32 = arith.constant 0 : i32
    %c0_i32_0 = arith.constant 0 : i32
    return %arg0, %c0_i32 : i32, i32
  }
  func.func @transform_6(%arg0: i32) -> (i32, i32) {
    %c0_i32 = arith.constant 0 : i32
    %c0_i32_0 = arith.constant 0 : i32
    return %arg0, %c0_i32 : i32, i32
  }
}

</mosaic_0001>

<bundles_post_ra>
// kernel: tpu_custom_call.1
= control target key start
LH: loop header
LB: loop body
LE: loop exit
PB: predicated region body
PF: predicated region fallthrough
CT: control target
= control target key end

     0   :  { %s879_s21 = smov 0   ;;  %s964_s0 = inlined_call_operand.vmem [shape: f32[64,48], index: 0, kind: input, shape index: {}]   ;;  %s965_s1 = inlined_call_operand.vmem [shape: bf16[48,32], index: 1, kind: input, shape index: {}]   ;;  %s966_s2 = inlined_call_operand.vmem [shape: f32[32,2], index: 2, kind: input, shape index: {}]   ;;  %s967_s3 = inlined_call_operand.vmem [shape: f32[32,2], index: 3, kind: input, shape index: {}]   ;;  %s968_s4 = inlined_call_operand.vmem [shape: bf16[64,32], index: 4, kind: output, shape index: {0}]   ;;  %s969_s5 = inlined_call_operand.vmem [shape: f32[64,2], index: 5, kind: output, shape index: {1}]   ;;  %s970_s6 = inlined_call_operand.vmem [shape: f32[64,2], index: 6, kind: output, shape index: {2}]  }
   0x1 LB: > { %s714_s22 = sadd.s32 4294967295, %s842_s21   ;;  %p718_p0 = scmp.ge.s32.totalorder %s842_s21, 1  ;;  %s842_s21 = sphi %s879_s21, %s17_s21  }
   0x2   : > { %p218_p1 = scmp.lt.s32.totalorder %s842_s21, 3 }
   0x4   : > { %p219_p2 = pnand %p718_p0, %p218_p1 }
   0x5   : > { %v833_v0 = vld [vmem:[%s965_s1] sm:$0xff] (!%p219_p2)   ;;  %s719_s25 = sshll.u32 (!%p219_p2), %s714_s22, 2  ;;  %v834_v1 = vld [vmem:[%s965_s1 + $0x8] sm:$0xff] (!%p219_p2)   ;;  %v371_v4 = vld [vmem:[%s966_s2 + $0x10] sm:$0xff] (!%p219_p2)  ;;  %vm313_vm0 = vcmask (!%p219_p2), 392192   ;;  %vm373_vm1 = vcmask (!%p219_p2), 261120  }
   0x6   : > { %222 = sbr.rel (%p219_p2) target bundleno = 461 (0x1cd), region = 36  ;;  %p259_p3 = scmp.lt.s32.totalorder (!%p219_p2), %s719_s25, 7  ;;  %771 = vmatprep.subr.bf16.mxu0 (!%p219_p2), %v833_v0  ;;  %v369_v2 = vld [vmem:[%s966_s2] sm:$0xff] (!%p219_p2)  ;;  %v370_v3 = vld [vmem:[%s966_s2 + $0x8] sm:$0xff] (!%p219_p2)  ;;  %v835_v5 = vld [vmem:[%s965_s1 + $0x10] sm:$0xff] (!%p219_p2)   ;;  %vm585_vm2 = vcmask (!%p219_p2), 257024  }
   0x7   : > { %772 = vmatpush3.bf16.msra.mxu0 (!%p219_p2), %v833_v0  ;;  %v809_v6 = vpack.c.bf16 (!%p219_p2), %v370_v3, %v369_v2  ;;  %v372_v7 = vld [vmem:[%s966_s2 + $0x18] sm:$0xff] (!%p219_p2)  ;;  %v476_v15 = vld [vmem:[%s967_s3] sm:$0xff] (!%p219_p2)  ;;  %v477_v16 = vld [vmem:[%s967_s3 + $0x8] sm:$0xff] (!%p219_p2)  ;;  %vm471_vm3 = vcmask (!%p219_p2), 15360  }
   0x8   : > { %773 = vmatprep.subr.bf16.mxu0 (!%p219_p2), %v834_v1  ;;  %v813_v8 = vpack.c.bf16 (!%p219_p2), %v372_v7, %v371_v4  ;;  %v817_v17 = vpack.c.bf16 (!%p219_p2), %v477_v16, %v476_v15  ;;  %v478_v18 = vld [vmem:[%s967_s3 + $0x10] sm:$0xff] (!%p219_p2)  ;;  %v479_v19 = vld [vmem:[%s967_s3 + $0x18] sm:$0xff] (!%p219_p2) }
   0x9   : > { %810 = vmatprep.subr.bf16.mxu1 (!%p219_p2), %v809_v6  ;;  %v821_v24 = vpack.c.bf16 (!%p219_p2), %v479_v19, %v478_v18 }
   0xa   : > { %812 = vmatpush3.bf16.msra.mxu1 (!%p219_p2), %v809_v6 }
   0xb   : > { %774 = vmatpush3.bf16.msra.mxu0 (!%p219_p2), %v834_v1  ;;  %814 = vmatprep.subr.bf16.mxu1 (!%p219_p2), %v813_v8 }
   0xc   : > { %775 = vmatprep.subr.bf16.mxu0 (!%p219_p2), %v835_v5 }
   0xd   : > { %s972_s25 = smov (!%p259_p3, %s719_s25), 7 }
   0xe   : > { %s911_s14 = sshll.u32 %s972_s25, 3  ;;  %816 = vmatpush3.bf16.msra.mxu1 %v813_v8  ;;  %s722_s23 = sshll.u32 %s972_s25, 2 }
   0xf   : > { %s262_s17 = scalar_lea.vmem %s964_s0, %s911_s14  ;;  %776 = vmatpush3.bf16.msra.mxu0 %v835_v5  ;;  %818 = vmatprep.subr.bf16.mxu1 %v817_v17  ;;  %s268_s7 = scalar_lea.vmem %s968_s4, %s722_s23 }
  0x10   : > { %v283_v9 = vld [vmem:[%s262_s17] sm:$0xff]  ;;  %v284_v10 = vld [vmem:[%s262_s17 + $0x8] sm:$0xff]  ;;  %v285_v11 = vld [vmem:[%s262_s17 + $0x10] sm:$0xff]  ;;  %s274_s9 = scalar_lea.vmem %s969_s5, %s911_s14  ;;  %s280_s12 = scalar_lea.vmem %s970_s6, %s911_s14 }
  0x11   : > { %v287_v12 = vpack.c.bf16 %v284_v10, %v283_v9  ;;  %v286_v13 = vld [vmem:[%s262_s17 + $0x18] sm:$0xff] }
  0x12   : > { %v288_v14 = vpack.c.bf16 %v286_v13, %v285_v11 }
  0x13   : > { %777 = vmatprep.mubr.msk.bf16.mxu0 %vm313_vm0, %v287_v12 }
  0x14   : > { %778 = vmatmul.mubr.msk.bf16.vlgmr.msra.gmra.mrb[0].mxu0 %vm313_vm0, %v288_v14 }
  0xe7   : > { %v779_v20 = vpop.f32.mrb[0].mxu0 }
  0xe8   : > { %v354_v21 = vpop.f32.mrb[1].mxu0  ;;  %v748_v27 = vpack.c.bf16 %v779_v20, %v779_v20 }
  0xe9   : > { %v746_v22 = vpack.c.bf16 %v354_v21, %v354_v21  ;;  %v780_v23 = vpop.f32.mrb[2].mxu0  ;;  %789 = vmatprep.mubr.msk.f32.mxu1 %vm373_vm1, %v354_v21 }
  0xea   : > { %v357_v25 = vpop.f32.mrb[3].mxu0  ;;  %v749_v28 = vpack.c.bf16 %v780_v23, %v780_v23  ;;  %588 = vst.msk [vmem:[%s268_s7 + $0x8] sm:$0xf] %vm585_vm2, %v748_v27 }
  0xeb   : > { %586 = vst.msk [vmem:[%s268_s7] sm:$0xf] %vm585_vm2, %v746_v22  ;;  %v747_v26 = vpack.c.bf16 %v357_v25, %v357_v25  ;;  %790 = vmatmul.mubr.msk.f32.vlgmr.msra.gmra.mrb[0].mxu1 %vm373_vm1, %v357_v25 }
  0xec   : > { %820 = vmatpush3.bf16.msra.mxu1 %v817_v17  ;;  %792 = vmatprep.mubr.msk.f32.mxu1 %vm373_vm1, %v779_v20  ;;  %589 = vst.msk [vmem:[%s268_s7 + $0xc] sm:$0xf] %vm585_vm2, %v749_v28 }
  0xed   : > { %587 = vst.msk [vmem:[%s268_s7 + $0x4] sm:$0xf] %vm585_vm2, %v747_v26  ;;  %822 = vmatprep.subr.bf16.mxu1 %v821_v24 }
  0xef   : > { %793 = vmatmul.mubr.msk.f32.gmra.mrb[2].mxu1 %vm373_vm1, %v780_v23 }
  0xf0   : > { %824 = vmatpush3.bf16.msra.mxu1 %v821_v24  ;;  %803 = vmatprep.mubr.msk.f32.mxu1 %vm373_vm1, %v354_v21 }
  0xf3   : > { %804 = vmatmul.mubr.msk.f32.vlgmr.msra.gmra.mrb[4].mxu1 %vm373_vm1, %v357_v25 }
  0xf4   : > { %806 = vmatprep.mubr.msk.f32.mxu1 %vm373_vm1, %v779_v20 }
  0xf7   : > { %807 = vmatmul.mubr.msk.f32.gmra.mrb[6].mxu1 %vm373_vm1, %v780_v23 }
 0x1be   : > { %v791_v29 = vpop.f32.mrb[0].mxu1 }
 0x1bf   : > { %v452_v30 = vpop.f32.mrb[1].mxu1  ;;  %473 = vst.msk [vmem:[%s274_s9 + $0x8] sm:$0xff] %vm471_vm3, %v791_v29 }
 0x1c0   : > { %472 = vst.msk [vmem:[%s274_s9] sm:$0xff] %vm471_vm3, %v452_v30 }
 0x1c2   : > { %v794_v31 = vpop.f32.mrb[2].mxu1 }
 0x1c3   : > { %v462_v32 = vpop.f32.mrb[3].mxu1  ;;  %475 = vst.msk [vmem:[%s274_s9 + $0x18] sm:$0xff] %vm471_vm3, %v794_v31 }
 0x1c4   : > { %474 = vst.msk [vmem:[%s274_s9 + $0x10] sm:$0xff] %vm471_vm3, %v462_v32 }
 0x1c6   : > { %v805_v33 = vpop.f32.mrb[4].mxu1 }
 0x1c7   : > { %v546_v34 = vpop.f32.mrb[5].mxu1  ;;  %566 = vst.msk [vmem:[%s280_s12 + $0x8] sm:$0xff] %vm471_vm3, %v805_v33 }
 0x1c8   : > { %565 = vst.msk [vmem:[%s280_s12] sm:$0xff] %vm471_vm3, %v546_v34 }
 0x1ca   : > { %v808_v35 = vpop.f32.mrb[6].mxu1 }
 0x1cb   : > { %v556_v36 = vpop.f32.mrb[7].mxu1  ;;  %568 = vst.msk [vmem:[%s280_s12 + $0x18] sm:$0xff] %vm471_vm3, %v808_v35 }
 0x1cc   : > { %567 = vst.msk [vmem:[%s280_s12 + $0x10] sm:$0xff] %vm471_vm3, %v556_v36 }
 0x1cd PF: > { %s17_s21 = sadd.s32 1, %s842_s21  }
 0x1ce   : > { %p14_p4 = scmp.ge.s32.totalorder %s17_s21, 4  }
 0x1d0   :  { %16 = sbr.rel (!%p14_p4) target bundleno = 1 (0x1), region = 90 }

</bundles_post_ra>
